<compile_context>
chip_gen: v7x
topology: tpu7x:2x2x1
jax: 0.10.0
libtpu: 0.0.40
codegen_flags: <defaults>
</compile_context>

<pallas_src>
import functools
import math

import jax
import jax.numpy as jnp
import numpy as np
from jax.experimental import pallas as pl
from jax.experimental.pallas import tpu as pltpu

_HID = 64           # hidden width of each MLP
_FUSE = 128         # fused lane width (actor || critic)
_OUT_LANES = 8      # output slab lanes: 0 = log_prob, 1 = value, rest zero
_MAX_TB = 1024      # batch-tile row cap (tiny VMEM even double-buffered)


def _round_up(x, m):
    return ((x + m - 1) // m) * m


def _choose_tiling(B):
    """Pick (TB, B_pad): TB multiple of 8, <=_MAX_TB, minimal row waste,
    and >=2 grid steps for moderate B so both v7x TensorCores get work."""
    B8 = _round_up(max(B, 1), 8)
    if B8 <= 8:
        n_tiles = 1
    else:
        n_tiles = max(2, pl.cdiv(B8, _MAX_TB))
    TB = _round_up(pl.cdiv(B8, n_tiles), 8)
    return TB, n_tiles * TB


def fused_eval_kernel(state_ref, action_ref, w1_ref, w2_ref, w3_ref, aux_ref,
                      out_ref, *, action_dim, logp_const):
    """One batch tile of ActorCritic.evaluate, fully fused.

    aux rows: 0=b1, 1=b2, 2=b3 (all 128 lanes), 3=inv_var (lanes [0:A]).
    Output lanes: 0 = log_prob, 1 = state value, rest zero.
    """
    x = state_ref[...]                            # (TB, S)
    a = action_ref[...]                           # (TB, A)

    b1 = aux_ref[0:1, :]
    b2 = aux_ref[1:2, :]
    b3 = aux_ref[2:3, :]
    inv_var = aux_ref[3:4, 0:action_dim]          # (1, A)

    # Fused actor+critic MLP: 3 lane-dense (…,128) matmuls on the MXU.
    h = jnp.tanh(jnp.dot(x, w1_ref[...], preferred_element_type=jnp.float32) + b1)
    h = jnp.tanh(jnp.dot(h, w2_ref[...], preferred_element_type=jnp.float32) + b2)
    head = jnp.dot(h, w3_ref[...], preferred_element_type=jnp.float32) + b3   # (TB,128)

    # Actor mean: tanh only on the A actor lanes (EUP work shrinks 16x).
    mu = jnp.tanh(head[:, 0:action_dim])                       # (TB, A)
    # Critic value lives (linearly) at lane A of the fused head.
    value = head[:, action_dim:action_dim + 1]                 # (TB, 1)

    # MVN(diag) log_prob: mahalanobis over the A real lanes only.
    diff = a - mu
    maha = jnp.sum(diff * diff * inv_var, axis=1, keepdims=True)   # (TB, 1)
    logp = logp_const - 0.5 * maha                                 # (TB, 1)

    # Narrow (TB, 8) store: lane 0 = logp, lane 1 = value, rest zero.
    lane = jax.lax.broadcasted_iota(jnp.int32, out_ref.shape, 1)
    out_ref[...] = jnp.where(lane == 0, logp,
                             jnp.where(lane == 1, value, 0.0))


def init_params(key, state_dim, action_dim, action_std):
    """Raw parameters (PyTorch-like uniform fan-in init), weights as (in,out)."""
    def linear(key, fan_in, fan_out):
        kw, kb = jax.random.split(key)
        bound = 1.0 / math.sqrt(fan_in)
        w = jax.random.uniform(kw, (fan_in, fan_out), jnp.float32, -bound, bound)
        b = jax.random.uniform(kb, (1, fan_out), jnp.float32, -bound, bound)
        return w, b

    keys = jax.random.split(key, 6)
    aw1, ab1 = linear(keys[0], state_dim, _HID)
    aw2, ab2 = linear(keys[1], _HID, _HID)
    aw3, ab3 = linear(keys[2], _HID, action_dim)
    cw1, cb1 = linear(keys[3], state_dim, _HID)
    cw2, cb2 = linear(keys[4], _HID, _HID)
    cw3, cb3 = linear(keys[5], _HID, 1)
    action_var = jnp.full((1, action_dim), action_std * action_std, jnp.float32)
    return dict(aw1=aw1, ab1=ab1, aw2=aw2, ab2=ab2, aw3=aw3, ab3=ab3,
                cw1=cw1, cb1=cb1, cw2=cw2, cb2=cb2, cw3=cw3, cb3=cb3,
                action_var=action_var)


def pack_params(raw, action_dim):
    """Pack raw params into the fused, lane-dense layout (done once per model)."""
    assert action_dim + 1 <= _FUSE
    H = _HID

    w1 = jnp.concatenate([raw["aw1"], raw["cw1"]], axis=1)            # (S, 128)

    w2 = jnp.zeros((2 * H, 2 * H), jnp.float32)                       # blockdiag
    w2 = w2.at[:H, :H].set(raw["aw2"]).at[H:, H:].set(raw["cw2"])     # (128, 128)

    w3 = jnp.zeros((2 * H, _FUSE), jnp.float32)                       # (128, 128)
    w3 = w3.at[:H, :action_dim].set(raw["aw3"])
    w3 = w3.at[H:, action_dim:action_dim + 1].set(raw["cw3"])

    b1 = jnp.concatenate([raw["ab1"], raw["cb1"]], axis=1)            # (1, 128)
    b2 = jnp.concatenate([raw["ab2"], raw["cb2"]], axis=1)            # (1, 128)
    b3 = jnp.zeros((1, _FUSE), jnp.float32)
    b3 = b3.at[:, :action_dim].set(raw["ab3"])
    b3 = b3.at[:, action_dim:action_dim + 1].set(raw["cb3"])

    aux = jnp.zeros((8, _FUSE), jnp.float32)
    aux = aux.at[0].set(b1[0]).at[1].set(b2[0]).at[2].set(b3[0])
    aux = aux.at[3, :action_dim].set(1.0 / raw["action_var"][0])

    # log_prob / entropy constants are batch-independent -> bake as Python
    # floats (one-time host compute; action_var is a fixed buffer).
    var = np.asarray(raw["action_var"], dtype=np.float64)
    k = float(action_dim)
    log2pi = math.log(2.0 * math.pi)
    sum_log_var = float(np.sum(np.log(var)))
    logp_const = float(-0.5 * (k * log2pi + sum_log_var))
    ent_const = float(0.5 * k * (1.0 + log2pi) + 0.5 * sum_log_var)

    return dict(w1=w1, w2=w2, w3=w3, aux=aux,
                logp_const=logp_const, ent_const=ent_const,
                action_dim=action_dim)


def actor_critic_evaluate(state, action, fused):
    """Pallas equivalent of ActorCritic.evaluate(state, action)."""
    B, S = state.shape
    A = fused["action_dim"]

    TB, B_pad = _choose_tiling(B)
    grid = (B_pad // TB,)

    # Minimal row padding only (at most a handful of rows); no lane padding.
    if B_pad != B:
        state = jnp.pad(state, ((0, B_pad - B), (0, 0)))
        action = jnp.pad(action, ((0, B_pad - B), (0, 0)))

    out = pl.pallas_call(
        functools.partial(fused_eval_kernel, action_dim=A,
                          logp_const=fused["logp_const"]),
        out_shape=jax.ShapeDtypeStruct((B_pad, _OUT_LANES), jnp.float32),
        grid_spec=pltpu.PrefetchScalarGridSpec(
            num_scalar_prefetch=0,
            grid=grid,
            in_specs=[
                pl.BlockSpec((TB, S), lambda i: (i, 0)),          # state tile
                pl.BlockSpec((TB, A), lambda i: (i, 0)),          # action tile (A lanes)
                pl.BlockSpec((S, _FUSE), lambda i: (0, 0)),       # w1 (resident)
                pl.BlockSpec((_FUSE, _FUSE), lambda i: (0, 0)),   # w2 (resident)
                pl.BlockSpec((_FUSE, _FUSE), lambda i: (0, 0)),   # w3 (resident)
                pl.BlockSpec((8, _FUSE), lambda i: (0, 0)),       # aux (resident)
            ],
            out_specs=pl.BlockSpec((TB, _OUT_LANES), lambda i: (i, 0)),
        ),
        compiler_params=pltpu.CompilerParams(
            dimension_semantics=("parallel",)),
    )(state, action, fused["w1"], fused["w2"], fused["w3"], fused["aux"])

    logp = out[:B, 0]
    value = out[:B, 1]
    # Entropy of a fixed diagonal Gaussian is batch-independent.
    ent = jnp.full((B,), fused["ent_const"], jnp.float32)
    return logp, value, ent


def _reference_evaluate(state, action, p):
    """Pure-JAX reference (mirrors the PyTorch module) for correctness check."""
    h = jnp.tanh(state @ p["aw1"] + p["ab1"])
    h = jnp.tanh(h @ p["aw2"] + p["ab2"])
    mu = jnp.tanh(h @ p["aw3"] + p["ab3"])
    c = jnp.tanh(state @ p["cw1"] + p["cb1"])
    c = jnp.tanh(c @ p["cw2"] + p["cb2"])
    v = c @ p["cw3"] + p["cb3"]
    var = p["action_var"]
    k = action.shape[1]
    diff = action - mu
    logp = -0.5 * (k * math.log(2 * math.pi)
                   + jnp.sum(jnp.log(var))
                   + jnp.sum(diff * diff / var, axis=1))
    ent = jnp.full((state.shape[0],),
                   0.5 * k * (1 + math.log(2 * math.pi)) + 0.5 * jnp.sum(jnp.log(var)))
    return logp, v[:, 0], ent


if __name__ == "__main__":
    B, STATE_DIM, ACTION_DIM, ACTION_STD = 8, 16, 4, 0.5

    key = jax.random.PRNGKey(0)
    k_params, k_state, k_action = jax.random.split(key, 3)

    raw = init_params(k_params, STATE_DIM, ACTION_DIM, ACTION_STD)
    fused = pack_params(raw, ACTION_DIM)

    state = jax.random.normal(k_state, (B, STATE_DIM), jnp.float32)
    action = jax.random.normal(k_action, (B, ACTION_DIM), jnp.float32)

    logp, value, ent = actor_critic_evaluate(state, action, fused)
    jax.block_until_ready((logp, value, ent))

    r_logp, r_value, r_ent = _reference_evaluate(state, action, raw)
    assert np.allclose(np.asarray(logp), np.asarray(r_logp), atol=1e-4)
    assert np.allclose(np.asarray(value), np.asarray(r_value), atol=1e-4)
    assert np.allclose(np.asarray(ent), np.asarray(r_ent), atol=1e-4)

    # TODO(synk): ActorCritic.act() (MVN sampling + memory side effects) is
    # host-side control flow and is intentionally not implemented as a kernel.

    print("KERNEL_OK")
</pallas_src>

<mosaic_0001>
module attributes {stable_mosaic.version = 11 : i64} {
  func.func @fused_eval_kernel(%arg0: i32, %arg1: memref<8x16xf32, #tpu.memory_space<vmem>>, %arg2: memref<8x4xf32, #tpu.memory_space<vmem>>, %arg3: memref<16x128xf32, #tpu.memory_space<vmem>>, %arg4: memref<128x128xf32, #tpu.memory_space<vmem>>, %arg5: memref<128x128xf32, #tpu.memory_space<vmem>>, %arg6: memref<8x128xf32, #tpu.memory_space<vmem>>, %arg7: memref<8x8xf32, #tpu.memory_space<vmem>>) attributes {dimension_semantics = [#tpu.dimension_semantics<parallel>], iteration_bounds = array<i64: 1>, scalar_prefetch = 0 : i64, scratch_operands = 0 : i64, tpu.core_type = #tpu.core_type<tc>, window_params = [{transform_indices = @transform_0, window_bounds = array<i64: 8, 16>}, {transform_indices = @transform_1, window_bounds = array<i64: 8, 4>}, {pipeline_mode = #tpu.pipeline_mode<synchronous>, transform_indices = @transform_2, window_bounds = array<i64: 16, 128>}, {pipeline_mode = #tpu.pipeline_mode<synchronous>, transform_indices = @transform_3, window_bounds = array<i64: 128, 128>}, {pipeline_mode = #tpu.pipeline_mode<synchronous>, transform_indices = @transform_4, window_bounds = array<i64: 128, 128>}, {pipeline_mode = #tpu.pipeline_mode<synchronous>, transform_indices = @transform_5, window_bounds = array<i64: 8, 128>}, {transform_indices = @transform_6, window_bounds = array<i64: 8, 8>}]} {
    %c0 = arith.constant 0 : index
    %c0_0 = arith.constant 0 : index
    %0 = vector.load %arg1[%c0, %c0_0] : memref<8x16xf32, #tpu.memory_space<vmem>>, vector<8x16xf32>
    %c0_1 = arith.constant 0 : index
    %c0_2 = arith.constant 0 : index
    %1 = vector.load %arg2[%c0_1, %c0_2] : memref<8x4xf32, #tpu.memory_space<vmem>>, vector<8x4xf32>
    %c0_3 = arith.constant 0 : index
    %c0_4 = arith.constant 0 : index
    %2 = vector.load %arg6[%c0_3, %c0_4] : memref<8x128xf32, #tpu.memory_space<vmem>>, vector<1x128xf32>
    %c1 = arith.constant 1 : index
    %c0_5 = arith.constant 0 : index
    %3 = vector.load %arg6[%c1, %c0_5] : memref<8x128xf32, #tpu.memory_space<vmem>>, vector<1x128xf32>
    %c2 = arith.constant 2 : index
    %c0_6 = arith.constant 0 : index
    %4 = vector.load %arg6[%c2, %c0_6] : memref<8x128xf32, #tpu.memory_space<vmem>>, vector<1x128xf32>
    %c3 = arith.constant 3 : index
    %c0_7 = arith.constant 0 : index
    %5 = vector.load %arg6[%c3, %c0_7] : memref<8x128xf32, #tpu.memory_space<vmem>>, vector<1x4xf32>
    %c0_8 = arith.constant 0 : index
    %c0_9 = arith.constant 0 : index
    %6 = vector.load %arg3[%c0_8, %c0_9] : memref<16x128xf32, #tpu.memory_space<vmem>>, vector<16x128xf32>
    %cst = arith.constant dense<0.000000e+00> : vector<8x128xf32>
    %7 = tpu.matmul %0, %6, %cst {dimension_numbers = #tpu.dot_dimension_numbers<[1], [0], [0], [1], [0, 0, 1, 1], [], []>} : vector<8x16xf32>, vector<16x128xf32>, vector<8x128xf32> -> vector<8x128xf32>
    %8 = vector.broadcast %2 : vector<1x128xf32> to vector<8x128xf32>
    %9 = arith.addf %7, %8 : vector<8x128xf32>
    %10 = math.tanh %9 : vector<8x128xf32>
    %c0_10 = arith.constant 0 : index
    %c0_11 = arith.constant 0 : index
    %11 = vector.load %arg4[%c0_10, %c0_11] : memref<128x128xf32, #tpu.memory_space<vmem>>, vector<128x128xf32>
    %cst_12 = arith.constant dense<0.000000e+00> : vector<8x128xf32>
    %12 = tpu.matmul %10, %11, %cst_12 {dimension_numbers = #tpu.dot_dimension_numbers<[1], [0], [0], [1], [0, 0, 1, 1], [], []>} : vector<8x128xf32>, vector<128x128xf32>, vector<8x128xf32> -> vector<8x128xf32>
    %13 = vector.broadcast %3 : vector<1x128xf32> to vector<8x128xf32>
    %14 = arith.addf %12, %13 : vector<8x128xf32>
    %15 = math.tanh %14 : vector<8x128xf32>
    %c0_13 = arith.constant 0 : index
    %c0_14 = arith.constant 0 : index
    %16 = vector.load %arg5[%c0_13, %c0_14] : memref<128x128xf32, #tpu.memory_space<vmem>>, vector<128x128xf32>
    %cst_15 = arith.constant dense<0.000000e+00> : vector<8x128xf32>
    %17 = tpu.matmul %15, %16, %cst_15 {dimension_numbers = #tpu.dot_dimension_numbers<[1], [0], [0], [1], [0, 0, 1, 1], [], []>} : vector<8x128xf32>, vector<128x128xf32>, vector<8x128xf32> -> vector<8x128xf32>
    %18 = vector.broadcast %4 : vector<1x128xf32> to vector<8x128xf32>
    %19 = arith.addf %17, %18 : vector<8x128xf32>
    %20 = vector.extract_strided_slice %19 {offsets = [0, 0], sizes = [8, 4], strides = [1, 1]} : vector<8x128xf32> to vector<8x4xf32>
    %21 = math.tanh %20 : vector<8x4xf32>
    %22 = vector.extract_strided_slice %19 {offsets = [0, 4], sizes = [8, 1], strides = [1, 1]} : vector<8x128xf32> to vector<8x1xf32>
    %23 = arith.subf %1, %21 : vector<8x4xf32>
    %24 = arith.mulf %23, %23 : vector<8x4xf32>
    %25 = vector.broadcast %5 : vector<1x4xf32> to vector<8x4xf32>
    %26 = arith.mulf %24, %25 : vector<8x4xf32>
    %cst_16 = arith.constant dense<0.000000e+00> : vector<8xf32>
    %27 = vector.multi_reduction <add>, %26, %cst_16 [1] : vector<8x4xf32> to vector<8xf32>
    %28 = vector.shape_cast %27 : vector<8xf32> to vector<8x1xf32>
    %cst_17 = arith.constant 5.000000e-01 : f32
    %29 = vector.broadcast %cst_17 : f32 to vector<8x1xf32>
    %30 = arith.mulf %29, %28 : vector<8x1xf32>
    %cst_18 = arith.constant -0.9031654 : f32
    %31 = vector.broadcast %cst_18 : f32 to vector<8x1xf32>
    %32 = arith.subf %31, %30 : vector<8x1xf32>
    %33 = tpu.iota {dimensions = array<i32: 1>} : vector<8x8xi32>
    %c0_i32 = arith.constant 0 : i32
    %34 = vector.broadcast %c0_i32 : i32 to vector<8x8xi32>
    %35 = arith.cmpi eq, %33, %34 : vector<8x8xi32>
    %c1_i32 = arith.constant 1 : i32
    %36 = vector.broadcast %c1_i32 : i32 to vector<8x8xi32>
    %37 = arith.cmpi eq, %33, %36 : vector<8x8xi32>
    %cst_19 = arith.constant 0.000000e+00 : f32
    %38 = vector.shape_cast %22 : vector<8x1xf32> to vector<8x1xf32>
    %39 = vector.broadcast %38 : vector<8x1xf32> to vector<8x8xf32>
    %40 = vector.broadcast %cst_19 : f32 to vector<8x8xf32>
    %41 = arith.select %37, %39, %40 : vector<8x8xi1>, vector<8x8xf32>
    %42 = vector.shape_cast %32 : vector<8x1xf32> to vector<8x1xf32>
    %43 = vector.broadcast %42 : vector<8x1xf32> to vector<8x8xf32>
    %44 = arith.select %35, %43, %41 : vector<8x8xi1>, vector<8x8xf32>
    %c0_20 = arith.constant 0 : index
    %c0_21 = arith.constant 0 : index
    %45 = vector.load %arg7[%c0_20, %c0_21] : memref<8x8xf32, #tpu.memory_space<vmem>>, vector<8x8xf32>
    tpu.vector_store %arg7[%c0_20, %c0_21], %44 {strides = array<i32>} : memref<8x8xf32, #tpu.memory_space<vmem>>, vector<8x8xf32>,
    return
  }
  func.func @transform_0(%arg0: i32) -> (i32, i32) {
    %c0_i32 = arith.constant 0 : i32
    %c0_i32_0 = arith.constant 0 : i32
    return %arg0, %c0_i32 : i32, i32
  }
  func.func @transform_1(%arg0: i32) -> (i32, i32) {
    %c0_i32 = arith.constant 0 : i32
    %c0_i32_0 = arith.constant 0 : i32
    return %arg0, %c0_i32 : i32, i32
  }
  func.func @transform_2(%arg0: i32) -> (i32, i32) {
    %c0_i32 = arith.constant 0 : i32
    %c0_i32_0 = arith.constant 0 : i32
    %c0_i32_1 = arith.constant 0 : i32
    return %c0_i32, %c0_i32_0 : i32, i32
  }
  func.func @transform_3(%arg0: i32) -> (i32, i32) {
    %c0_i32 = arith.constant 0 : i32
    %c0_i32_0 = arith.constant 0 : i32
    %c0_i32_1 = arith.constant 0 : i32
    return %c0_i32, %c0_i32_0 : i32, i32
  }
  func.func @transform_4(%arg0: i32) -> (i32, i32) {
    %c0_i32 = arith.constant 0 : i32
    %c0_i32_0 = arith.constant 0 : i32
    %c0_i32_1 = arith.constant 0 : i32
    return %c0_i32, %c0_i32_0 : i32, i32
  }
  func.func @transform_5(%arg0: i32) -> (i32, i32) {
    %c0_i32 = arith.constant 0 : i32
    %c0_i32_0 = arith.constant 0 : i32
    %c0_i32_1 = arith.constant 0 : i32
    return %c0_i32, %c0_i32_0 : i32, i32
  }
  func.func @transform_6(%arg0: i32) -> (i32, i32) {
    %c0_i32 = arith.constant 0 : i32
    %c0_i32_0 = arith.constant 0 : i32
    return %arg0, %c0_i32 : i32, i32
  }
}

</mosaic_0001>

<bundles_post_ra>
// kernel: tpu_custom_call.1
= control target key start
LH: loop header
LB: loop body
LE: loop exit
PB: predicated region body
PF: predicated region fallthrough
CT: control target
= control target key end

     0   :  { %11 = vsyncpa [#allocation3], 0  ;;  %s795_s0 = inlined_call_operand.hbm [shape: f32[8,16], index: 0, kind: input, shape index: {}]   ;;  %s796_s1 = inlined_call_operand.vmem [shape: f32[8,4], index: 1, kind: input, shape index: {}]   ;;  %s797_s2 = inlined_call_operand.vmem [shape: f32[16,128], index: 2, kind: input, shape index: {}]   ;;  %s798_s3 = inlined_call_operand.hbm [shape: f32[128,128], index: 3, kind: input, shape index: {}]   ;;  %s799_s4 = inlined_call_operand.hbm [shape: f32[128,128], index: 4, kind: input, shape index: {}]   ;;  %s800_s5 = inlined_call_operand.vmem [shape: f32[8,128], index: 5, kind: input, shape index: {}]   ;;  %s801_s6 = inlined_call_operand.hbm [shape: f32[8,8], index: 6, kind: output, shape index: {}]  }
   0x1   :  { %12 = vsyncpa [#allocation6], 0 }
   0x2   :  { %13 = vsyncpa [#allocation4], 0  ;;  %s655_s21 = smov [#allocation5]   ;;  %s561_s25 = scalar_lea.hbm %s798_s3, 2048 }
   0x3   :  { %s33_s22 = sshll.u32 %s655_s21, 4  ;;  %p562_p0 = scmp.ne.s32.totalorder %s798_s3, %s561_s25  ;;  %s34_s22 = int_to_ptr.vmem [resolvable:$true] %s33_s22 }
   0x4   :  { %p565_p1 = scmp.lt.u32.totalorder %s561_s25, %s798_s3 }
   0x6   :  { %p567_p2 = pnand %p565_p1, %p562_p0 }
   0x8   :  { %570 = shalt.err (!%p567_p2)
}
   0x9   :  { %s571_s30 = scalar_lea.vmem %s34_s22, 2048  ;;  %p576_p4 = scmp.lt.s32.totalorder %s34_s22, %s34_s22 }
   0xa   :  { %p572_p3 = scmp.ne.s32.totalorder %s34_s22, %s571_s30  ;;  %p577_p5 = scmp.lt.s32.totalorder %s571_s30, %s571_s30 }
   0xc   :  { %p578_p6 = por %p577_p5, %p576_p4 }
   0xe   :  { %p579_p7 = pnand %p578_p6, %p572_p3 }
  0x10   :  { %582 = shalt.err (!%p579_p7)
}
  0x11   :  { %s656_s7 = smov 128   ;;  %s657_s8 = smov 8  }
  0x12   :  { %39 = dma.hbm_to_vmem [thread:$0]  %s798_s3, 2048, %s34_s22, [#allocation6], %s656_s7, %s656_s7, %s657_s8  }
  0x13   :  { %s658_s11 = smov [#allocation2]   ;;  %s659_s13 = smov [#allocation7]  }
  0x14   :  { %s20_s12 = sshll.u32 %s658_s11, 4  ;;  %s45_s14 = sshll.u32 %s659_s13, 4  ;;  %s21_s12 = int_to_ptr.vmem [resolvable:$true] %s20_s12  ;;  %s46_s14 = int_to_ptr.vmem [resolvable:$true] %s45_s14 }
  0x15   :  { %s583_s17 = scalar_lea.hbm %s795_s0, 128 }
  0x16   :  { %p584_p8 = scmp.ne.s32.totalorder %s795_s0, %s583_s17  ;;  %p587_p9 = scmp.lt.u32.totalorder %s583_s17, %s795_s0 }
  0x18   :  { %p589_p10 = pnand %p587_p9, %p584_p8 }
  0x1a   :  { %592 = shalt.err (!%p589_p10)
}
  0x1b   :  { %s593_s3 = scalar_lea.vmem %s21_s12, 128  ;;  %p598_p12 = scmp.lt.s32.totalorder %s21_s12, %s21_s12 }
  0x1c   :  { %p594_p11 = scmp.ne.s32.totalorder %s21_s12, %s593_s3  ;;  %p599_p13 = scmp.lt.s32.totalorder %s593_s3, %s593_s3 }
  0x1e   :  { %p600_p0 = por %p599_p13, %p598_p12 }
  0x20   :  { %p601_p1 = pnand %p600_p0, %p594_p11 }
  0x22   :  { %604 = shalt.err (!%p601_p1)
}
  0x23   :  { %23 = dma.hbm_to_vmem [thread:$0]  %s795_s0, 128, %s21_s12, [#allocation3]  }
  0x24   :  { %s605_s26 = scalar_lea.hbm %s799_s4, 2048 }
  0x25   :  { %p606_p2 = scmp.ne.s32.totalorder %s799_s4, %s605_s26  ;;  %p609_p3 = scmp.lt.u32.totalorder %s605_s26, %s799_s4 }
  0x27   :  { %p611_p4 = pnand %p609_p3, %p606_p2 }
  0x29   :  { %614 = shalt.err (!%p611_p4)
}
  0x2a   :  { %s615_s9 = scalar_lea.vmem %s46_s14, 2048  ;;  %p620_p6 = scmp.lt.s32.totalorder %s46_s14, %s46_s14 }
  0x2b   :  { %p616_p5 = scmp.ne.s32.totalorder %s46_s14, %s615_s9  ;;  %p621_p7 = scmp.lt.s32.totalorder %s615_s9, %s615_s9 }
  0x2d   :  { %p622_p8 = por %p621_p7, %p620_p6 }
  0x2f   :  { %p623_p9 = pnand %p622_p8, %p616_p5 }
  0x31   :  { %626 = shalt.err (!%p623_p9)
}
  0x32   :  { %51 = dma.hbm_to_vmem [thread:$0]  %s799_s4, 2048, %s46_s14, [#allocation6], %s656_s7, %s656_s7, %s657_s8  }
  0x33   :  { %649 = dma.done.wait [#allocation3], 128  }
  0x34   :  { %650 = vsyncadd [#allocation3], 4294967168 }
  0x35   :  { %651 = dma.done.wait [#allocation6], 4096  }
  0x36   :  { %652 = vsyncadd [#allocation6], 4294963200  ;;  %v660_v0 = vmov 0.0|0.0   ;;  %vm661_vm0 = vmmov 0   ;;  %v662_v1 = vmov 0.0   ;;  %v69_v2 = vld [vmem:[%s797_s2] sm:$0xff] }
  0x37   :  { %493 = vmatprep.subr.bf16.mxu0 %v660_v0  ;;  %420 = vmatprep.mubr.msk.f32.mxu0 %vm661_vm0, %v662_v1  ;;  %v70_v3 = vld [vmem:[%s797_s2 + $0x8] sm:$0xff]  ;;  %v151_v6 = vld [vmem:[#allocation5 + $0x8] sm:$0xff]  ;;  %v152_v7 = vld [vmem:[#allocation5 + $0x10] sm:$0xff]  ;;  %vm75_vm1 = vcmask 130048   ;;  %vm339_vm2 = vcmask 31744   ;;  %s664_s21 = smov [#allocation8]  }
  0x38   :  { %496 = vmatprep.subr.bf16.mxu1 %v660_v0  ;;  %455 = vmatprep.mubr.msk.f32.mxu1 %vm661_vm0, %v662_v1  ;;  %v494_v4 = vpack.c.bf16 %v70_v3, %v69_v2  ;;  %v150_v5 = vld [vmem:[#allocation5] sm:$0xff]  ;;  %v153_v9 = vld [vmem:[#allocation5 + $0x18] sm:$0xff]  ;;  %v155_v13 = vld [vmem:[#allocation5 + $0x28] sm:$0xff]  ;;  %s364_s3 = sshll.u32 %s664_s21, 4  ;;  %vm356_vm5 = vcmask 64512   ;;  %s365_s3 = int_to_ptr.vmem [resolvable:$true] %s364_s3 }
  0x39   :  { %v497_v8 = vpack.c.bf16 %v151_v6, %v150_v5  ;;  %v63_v10 = vld [vmem:[#allocation2] sm:$0xff]  ;;  %v500_v11 = vpack.c.bf16 %v153_v9, %v152_v7  ;;  %v154_v12 = vld [vmem:[#allocation5 + $0x20] sm:$0xff]  ;;  %v156_v15 = vld [vmem:[#allocation5 + $0x30] sm:$0xff]  ;;  %p632_p11 = scmp.lt.s32.totalorder %s365_s3, %s365_s3 }
  0x3a   :  { %495 = vmatpush3.bf16.msra.mxu0 %v494_v4  ;;  %v503_v14 = vpack.c.bf16 %v155_v13, %v154_v12  ;;  %v157_v16 = vld [vmem:[#allocation5 + $0x38] sm:$0xff]  ;;  %v158_v18 = vld [vmem:[#allocation5 + $0x40] sm:$0xff]  ;;  %v159_v19 = vld [vmem:[#allocation5 + $0x48] sm:$0xff]  ;;  %v345_v12 = vlaneseq }
  0x3b   :  { %498 = vmatpush3.bf16.msra.mxu1 %v497_v8  ;;  %520 = vmatprep.subr.bf16.mxu0 %v660_v0  ;;  %v506_v17 = vpack.c.bf16 %v157_v16, %v156_v15  ;;  %v509_v20 = vpack.c.bf16 %v159_v19, %v158_v18  ;;  %v160_v21 = vld [vmem:[#allocation5 + $0x50] sm:$0xff]  ;;  %v161_v22 = vld [vmem:[#allocation5 + $0x58] sm:$0xff]  ;;  %v162_v24 = vld [vmem:[#allocation5 + $0x60] sm:$0xff] }
  0x3c   :  { %499 = vmatprep.subr.bf16.mxu1 %v660_v0  ;;  %v512_v23 = vpack.c.bf16 %v161_v22, %v160_v21  ;;  %v163_v25 = vld [vmem:[#allocation5 + $0x68] sm:$0xff]  ;;  %v164_v27 = vld [vmem:[#allocation5 + $0x70] sm:$0xff]  ;;  %v165_v28 = vld [vmem:[#allocation5 + $0x78] sm:$0xff] }
  0x3d   :  { %421 = vmatmul.mubr.msk.f32.vlgmr.msra.gmra.mrb[0].mxu0 %vm75_vm1, %v63_v10  ;;  %v515_v26 = vpack.c.bf16 %v163_v25, %v162_v24  ;;  %v518_v29 = vpack.c.bf16 %v165_v28, %v164_v27  ;;  %v241_v30 = vld [vmem:[#allocation7] sm:$0xff]  ;;  %v242_v31 = vld [vmem:[#allocation7 + $0x8] sm:$0xff]  ;;  %v243_v32 = vld [vmem:[#allocation7 + $0x10] sm:$0xff] }
  0x3e   :  { %490 = vmatprep.mubr.msk.f32.mxu0 %vm661_vm0, %v662_v1  ;;  %v521_v33 = vpack.c.bf16 %v242_v31, %v241_v30  ;;  %v244_v34 = vld [vmem:[#allocation7 + $0x18] sm:$0xff]  ;;  %v245_v36 = vld [vmem:[#allocation7 + $0x20] sm:$0xff]  ;;  %v246_v37 = vld [vmem:[#allocation7 + $0x28] sm:$0xff]  ;;  %v663_v1 = vmov 4  }
  0x3f   :  { %501 = vmatpush3.bf16.msra.mxu1 %v500_v11  ;;  %v524_v35 = vpack.c.bf16 %v244_v34, %v243_v32  ;;  %v527_v38 = vpack.c.bf16 %v246_v37, %v245_v36  ;;  %v247_v39 = vld [vmem:[#allocation7 + $0x30] sm:$0xff]  ;;  %v248_v40 = vld [vmem:[#allocation7 + $0x38] sm:$0xff]  ;;  %v249_v42 = vld [vmem:[#allocation7 + $0x40] sm:$0xff]  ;;  %554 = vset.pattern.permute.xlu0 %v663_v1 }
  0x40   :  { %502 = vmatprep.subr.bf16.mxu1 %v660_v0  ;;  %522 = vmatpush3.bf16.msra.mxu0 %v521_v33  ;;  %v530_v41 = vpack.c.bf16 %v248_v40, %v247_v39  ;;  %v250_v43 = vld [vmem:[#allocation7 + $0x48] sm:$0xff]  ;;  %v374_v45 = vld [vmem:[%s800_s5] ss:$0 sm:$0xff]  ;;  %v251_v50 = vld [vmem:[#allocation7 + $0x50] sm:$0xff] }
  0x41   :  { %523 = vmatprep.subr.bf16.mxu0 %v660_v0  ;;  %v533_v44 = vpack.c.bf16 %v250_v43, %v249_v42  ;;  %v252_v51 = vld [vmem:[#allocation7 + $0x58] sm:$0xff]  ;;  %v253_v53 = vld [vmem:[#allocation7 + $0x60] sm:$0xff]  ;;  %v254_v54 = vld [vmem:[#allocation7 + $0x68] sm:$0xff] }
  0x42   :  { %v536_v52 = vpack.c.bf16 %v252_v51, %v251_v50  ;;  %v539_v55 = vpack.c.bf16 %v254_v54, %v253_v53  ;;  %v255_v56 = vld [vmem:[#allocation7 + $0x70] sm:$0xff]  ;;  %v256_v57 = vld [vmem:[#allocation7 + $0x78] sm:$0xff] }
  0x43   :  { %504 = vmatpush3.bf16.msra.mxu1 %v503_v14  ;;  %v542_v58 = vpack.c.bf16 %v256_v57, %v255_v56  ;;  %v376_v59 = vld [vmem:[%s800_s5 + $0x1] ss:$0 sm:$0xff]  ;;  %v377_v2 = vld [vmem:[%s800_s5 + $0x2] ss:$0 sm:$0xff]  ;;  %v378_v8 = vld [vmem:[%s800_s5 + $0x3] ss:$0 sm:$0xff] }
  0x44   :  { %505 = vmatprep.subr.bf16.mxu1 %v660_v0  ;;  %525 = vmatpush3.bf16.msra.mxu0 %v524_v35  ;;  %v64_v5 = vld [vmem:[%s796_s1] sm:$0xff]  ;;  %v346_v14 = vand.u32 127, %v345_v12  ;;  %s627_s1 = scalar_lea.vmem %s365_s3, 128 }
  0x45   :  { %526 = vmatprep.subr.bf16.mxu0 %v660_v0  ;;  %p628_p10 = scmp.ne.s32.totalorder %s365_s3, %s627_s1  ;;  %p633_p12 = scmp.lt.s32.totalorder %s627_s1, %s627_s1 }
  0x46   :  { %vm348_vm3 = vcmp.eq.s32.totalorder %v346_v14, 1  ;;  %vm347_vm4 = vcmp.eq.s32.totalorder %v346_v14, 0 }
  0x47   :  { %507 = vmatpush3.bf16.msra.mxu1 %v506_v17  ;;  %p634_p13 = por %p633_p12, %p632_p11 }
  0x48   :  { %508 = vmatprep.subr.bf16.mxu1 %v660_v0  ;;  %528 = vmatpush3.bf16.msra.mxu0 %v527_v38 }
  0x49   :  { %529 = vmatprep.subr.bf16.mxu0 %v660_v0  ;;  %p635_p0 = pnand %p634_p13, %p628_p10 }
  0x4b   :  { %510 = vmatpush3.bf16.msra.mxu1 %v509_v20 }
  0x4c   :  { %511 = vmatprep.subr.bf16.mxu1 %v660_v0  ;;  %531 = vmatpush3.bf16.msra.mxu0 %v530_v41 }
  0x4d   :  { %532 = vmatprep.subr.bf16.mxu0 %v660_v0 }
  0x4f   :  { %513 = vmatpush3.bf16.msra.mxu1 %v512_v23 }
  0x50   :  { %514 = vmatprep.subr.bf16.mxu1 %v660_v0  ;;  %534 = vmatpush3.bf16.msra.mxu0 %v533_v44 }
  0x51   :  { %535 = vmatprep.subr.bf16.mxu0 %v660_v0 }
  0x53   :  { %516 = vmatpush3.bf16.msra.mxu1 %v515_v26 }
  0x54   :  { %517 = vmatprep.subr.bf16.mxu1 %v660_v0  ;;  %537 = vmatpush3.bf16.msra.mxu0 %v536_v52 }
  0x55   :  { %538 = vmatprep.subr.bf16.mxu0 %v660_v0 }
  0x57   :  { %519 = vmatpush3.bf16.msra.mxu1 %v518_v29 }
  0x58   :  { %540 = vmatpush3.bf16.msra.mxu0 %v539_v55 }
  0x59   :  { %541 = vmatprep.subr.bf16.mxu0 %v660_v0 }
  0x5c   :  { %543 = vmatpush3.bf16.msra.mxu0 %v542_v58 }
 0x110   :  { %v145_v46 = vpop.f32.mrb[0].mxu0 }
 0x111   :  { %v146_v47 = vadd.f32 %v374_v45, %v145_v46  ;;  %v422_v48 = vpop.f32.mrb[1].mxu0 }
 0x113   :  { %555 = vtanh.f32 %v146_v47 }
 0x11d   :  { %v556_v49 = vpop.eup %555 }
 0x11e   :  { %456 = vmatmul.mubr.f32.vlgmr.msra.gmra.mrb[0].mxu1 %v556_v49 }
 0x1f1   :  { %v236_v60 = vpop.f32.mrb[0].mxu1 }
 0x1f2   :  { %v237_v61 = vadd.f32 %v376_v59, %v236_v60  ;;  %v457_v62 = vpop.f32.mrb[1].mxu1 }
 0x1f4   :  { %557 = vtanh.f32 %v237_v61 }
 0x1fe   :  { %v558_v63 = vpop.eup %557 }
 0x1ff   :  { %491 = vmatmul.mubr.f32.vlgmr.msra.gmra.mrb[2].mxu0 %v558_v63 }
 0x2d2   :  { %v327_v3 = vpop.f32.mrb[2].mxu0 }
 0x2d3   :  { %v328_v4 = vadd.f32 %v377_v2, %v327_v3  ;;  %v492_v0 = vpop.f32.mrb[3].mxu0 }
 0x2d5   :  { %559 = vtanh.f32 %v328_v4 }
 0x2df   :  { %v560_v6 = vpop.eup %559 }
 0x2e0   :  { %v332_v7 = vsub.f32 %v64_v5, %v560_v6 }
 0x2e2   :  { %v333_v9 = vmul.f32 %v332_v7, %v332_v7 }
 0x2e4   :  { %v338_v10 = vmul.f32 %v378_v8, %v333_v9 }
 0x2e6   :  { %v340_v11 = vsel %vm339_vm2, %v338_v10, 0.0 }
 0x2e7   :  { %341 = vadd.xlane.f32.xlu0 %v340_v11 }
 0x2fd   :  { %351 = vperm.xlu0 %554, %v328_v4  }
 0x374   :  { %v342_v13 = vpop.xlane.xlu0 %341 }
 0x375   :  { %v343_v15 = vmul.f32 0.5, %v342_v13 }
 0x377   :  { %v344_v16 = vsub.f32 -0.9031654, %v343_v15 }
 0x37c   :  { %v352_v17 = vpop.permute.xlu0 %351 }
 0x37d   :  { %v354_v18 = vsel %vm348_vm3, %v352_v17, 0.0 }
 0x37e   :  { %v355_v19 = vsel %vm347_vm4, %v344_v16, %v354_v18 }
 0x37f   :  { %357 = vst.msk [vmem:[#allocation8] sm:$0xff] %vm356_vm5, %v355_v19 }
 0x380   :  { %638 = shalt.err (!%p635_p0)
}
 0x381   :  { %s639_s23 = scalar_lea.hbm %s801_s6, 128 }
 0x382   :  { %p640_p1 = scmp.ne.s32.totalorder %s801_s6, %s639_s23  ;;  %p643_p2 = scmp.lt.u32.totalorder %s639_s23, %s801_s6 }
 0x384   :  { %p645_p3 = pnand %p643_p2, %p640_p1 }
 0x386   :  { %648 = shalt.err (!%p645_p3)
}
 0x387   :  { %367 = dma.vmem_to_hbm [thread:$0]  %s365_s3, 128, %s801_s6, [#allocation4]  }
 0x388   :  { %653 = dma.done.wait [#allocation4], 128  }
 0x389   :  { %654 = vsyncadd [#allocation4], 4294967168 }
 0x38a   :  { %371 = vsyncpa [#allocation3], 1 }
 0x38b   :  { %372 = vsyncpa [#allocation6], 1 }
 0x38c   :  { %373 = vsyncpa [#allocation4], 1 }

</bundles_post_ra>
